<compile_context>
chip_gen: v5e
topology: v5e:2x2
jax: 0.10.0
libtpu: 0.0.40
codegen_flags: <defaults>
</compile_context>

<pallas_src>
import functools

import jax
import jax.numpy as jnp
from jax.experimental import pallas as pl
from jax.experimental.pallas import tpu as pltpu


def _l2_row_kernel(*refs, num_points, has_nf, has_weight):
    """Per-row L2 loss for one tile of rows.

    Ref order: [nf (SMEM, optional)] pair_mat, pred, target, [weight], out.
      pair_mat : (2K, K) f32 constant, VMEM-resident (index_map (0, 0)).
      pred/target : (TN, 2K) interleaved [x0,y0,x1,y1,...] planes, native dtype.
      weight : (TN, 1) f32 per-row weight (optional).
      out : (TN, 1) f32 per-row loss.
    """
    idx = 0
    nf_ref = None
    if has_nf:
        nf_ref = refs[idx]
        idx += 1
    pm_ref = refs[idx]
    idx += 1
    p_ref = refs[idx]
    idx += 1
    t_ref = refs[idx]
    idx += 1
    w_ref = None
    if has_weight:
        w_ref = refs[idx]
        idx += 1
    out_ref = refs[idx]

    p = p_ref[...].astype(jnp.float32)
    t = t_ref[...].astype(jnp.float32)
    if has_nf:
        t = t * nf_ref[0]
    d = p - t
    d2 = d * d                                              # (TN, 2K), >= 0

    # Pair adjacent lanes: s[:, k] = d2[:, 2k] + d2[:, 2k+1], via the
    # precomputed 0/1 pairing matrix on the otherwise-idle MXU.
    s = jnp.dot(d2, pm_ref[...], preferred_element_type=jnp.float32)  # (TN, K)

    dist = jnp.sqrt(s)                                      # Euclidean distances
    loss = jnp.sum(dist, axis=1, keepdims=True) * (1.0 / num_points)  # (TN, 1)
    if has_weight:
        loss = loss * w_ref[...]
    out_ref[...] = loss


def _is_multi_tensorcore():
    """True only on parts with >1 TensorCore per chip (v7x)."""
    try:
        kind = jax.devices()[0].device_kind.lower()
    except Exception:  # pragma: no cover - defensive
        return False
    return ("v7" in kind) or ("7x" in kind)


def _pick_tile_rows(n, budget=4096, multi_tc=False):
    """Row tile: big enough to amortize grid-step overhead, legal for (8,128).

    multi_tc (v7x): always produce >= 2 (even, balanced) grid steps so both
    TensorCores get work; tile is a multiple of 16 when it is a partial block.
    single TC (v5e/v6e): one full-row block for small N, `budget` otherwise.
    """
    budget = max(16, (budget // 16) * 16)
    if multi_tc and n > 16:
        steps = max(2, 2 * ((n + 2 * budget - 1) // (2 * budget)))
        tile = (n + steps - 1) // steps
        tile = ((tile + 15) // 16) * 16
        if tile >= n:
            return n
        return tile
    if n <= budget:
        return n
    return budget


def _vmem_limit_bytes(tile_n, two_k, itemsize):
    """Scoped-VMEM budget: double-buffered inputs (with 128-lane padding),
    f32 temporaries and the double-buffered output, with headroom.  Clamped to
    48 MiB so it is safe on v7x's 64 MiB physical VMEM."""
    lanes = ((two_k + 127) // 128) * 128
    in_bufs = tile_n * lanes * itemsize * 2 * 2      # 2 inputs x 2 pipeline bufs
    temps = tile_n * lanes * 4 * 3                   # f32 upcasts + d2
    out_bufs = tile_n * 128 * 4 * 2                  # (TN, 1) pads to 128 lanes
    need = in_bufs + temps + out_bufs + (2 << 20)
    return int(min(max(need, 32 << 20), 48 << 20))


def _l2_loss_rowwise(pred2d, target2d, normalize_factor, weight,
                     *, tile_budget=4096):
    """pred2d/target2d: (N, 2K) interleaved planes -> per-row loss (N,) f32."""
    n, two_k = pred2d.shape
    assert two_k % 2 == 0
    k = two_k // 2

    multi_tc = _is_multi_tensorcore()
    tile_n = _pick_tile_rows(n, tile_budget, multi_tc)
    grid = (pl.cdiv(n, tile_n),)

    has_nf = normalize_factor is not None
    has_weight = weight is not None

    # Constant (2K, K) pairing matrix, DMA'd once and kept VMEM-resident.
    row = jnp.arange(two_k, dtype=jnp.int32)[:, None]
    col = jnp.arange(k, dtype=jnp.int32)[None, :]
    pair_mat = ((row // 2) == col).astype(jnp.float32)

    operands = []
    in_specs = []
    if has_nf:
        nf = jnp.asarray(normalize_factor, jnp.float32).reshape((1,))
        operands.append(nf)
        in_specs.append(pl.BlockSpec(memory_space=pltpu.MemorySpace.SMEM))

    row_spec = pl.BlockSpec((tile_n, two_k), lambda i: (i, 0))
    operands += [pair_mat, pred2d, target2d]
    in_specs += [pl.BlockSpec((two_k, k), lambda i: (0, 0)),
                 row_spec, row_spec]

    if has_weight:
        w2d = weight.astype(jnp.float32).reshape(n, 1)
        operands.append(w2d)
        in_specs.append(pl.BlockSpec((tile_n, 1), lambda i: (i, 0)))

    itemsize = jnp.dtype(pred2d.dtype).itemsize
    cost = pl.CostEstimate(
        flops=int(4 * n * two_k + 2 * n * two_k * k),
        transcendentals=int(n * k),
        bytes_accessed=int(2 * n * two_k * itemsize + 4 * n + two_k * k * 4),
    )

    out = pl.pallas_call(
        functools.partial(_l2_row_kernel, num_points=k,
                          has_nf=has_nf, has_weight=has_weight),
        out_shape=jax.ShapeDtypeStruct((n, 1), jnp.float32),
        grid=grid,
        in_specs=in_specs,
        out_specs=pl.BlockSpec((tile_n, 1), lambda i: (i, 0)),
        compiler_params=pltpu.CompilerParams(
            dimension_semantics=("parallel",),
            vmem_limit_bytes=_vmem_limit_bytes(tile_n, two_k, itemsize)),
        cost_estimate=cost,
    )(*operands)
    return out[:, 0]


def l2_loss_forward(pred, target, normalize_factor=None, weight=None,
                    avg_factor=None, reduction_override=None,
                    beta=1.0, reduction='mean', loss_weight=1.0):
    """Forward pass of mmdet L2Loss (beta unused, matching the reference)."""
    assert reduction_override in (None, 'none', 'mean', 'sum')
    reduction = reduction_override if reduction_override else reduction
    assert pred.shape == target.shape

    # Present both 2-D (N, 2K) and 3-D (N, K, 2) inputs as interleaved (N, 2K).
    if pred.ndim == 3:
        n, k, two = pred.shape
        assert two == 2
        pred2d = pred.reshape(n, 2 * k)      # free row-major view
        target2d = target.reshape(n, 2 * k)
    else:
        pred2d, target2d = pred, target

    # Per-row loss (weight fused into the kernel when provided).
    loss = _l2_loss_rowwise(pred2d, target2d, normalize_factor, weight)

    # weight_reduce_loss scalar reductions (tiny JAX glue).
    if avg_factor is None:
        if reduction == 'mean':
            loss = jnp.mean(loss)
        elif reduction == 'sum':
            loss = jnp.sum(loss)
        # 'none' -> keep per-row loss
    else:
        if reduction == 'mean':
            loss = jnp.sum(loss) / avg_factor
        elif reduction != 'none':
            raise ValueError('avg_factor can not be used with reduction="sum"')

    return loss_weight * loss


def _reference(pred, target, normalize_factor=None, weight=None,
               avg_factor=None, reduction='mean', loss_weight=1.0):
    """Pure-jnp reference for verification."""
    if normalize_factor is not None:
        target = target * normalize_factor
    if pred.ndim == 2:
        pred = pred.reshape(pred.shape[0], -1, 2)
        target = target.reshape(target.shape[0], -1, 2)
    pred = pred.astype(jnp.float32)
    target = target.astype(jnp.float32)
    loss = jnp.sqrt(((pred - target) ** 2).sum(2)).sum(1) / pred.shape[1]
    if weight is not None:
        loss = loss * weight.astype(loss.dtype)
    if avg_factor is None:
        if reduction == 'mean':
            loss = jnp.mean(loss)
        elif reduction == 'sum':
            loss = jnp.sum(loss)
    else:
        if reduction == 'mean':
            loss = jnp.sum(loss) / avg_factor
    return loss_weight * loss


if __name__ == "__main__":
    key = jax.random.PRNGKey(0)
    k1, k2, k3 = jax.random.split(key, 3)

    # (num_pixel, 36, 2) as in the module docstring; N deliberately not a
    # multiple of 8 to exercise the partial-block / no-padding path.
    N, K = 130, 36
    pred = jax.random.normal(k1, (N, K, 2), dtype=jnp.float32)
    target = jax.random.normal(k2, (N, K, 2), dtype=jnp.float32)

    # 1) 3-D input, mean reduction, normalize_factor + loss_weight.
    loss = l2_loss_forward(pred, target, normalize_factor=0.5,
                           reduction='mean', loss_weight=2.0)
    loss = jax.block_until_ready(loss)
    ref = _reference(pred, target, normalize_factor=0.5,
                     reduction='mean', loss_weight=2.0)
    assert jnp.allclose(loss, ref, rtol=1e-5, atol=1e-5), (loss, ref)

    # 2) 2-D (N, 4) input, 'none' reduction, per-row weight (fused in-kernel).
    pred2 = jax.random.normal(k1, (N, 4), dtype=jnp.float32)
    target2 = jax.random.normal(k2, (N, 4), dtype=jnp.float32)
    weight = jax.random.uniform(k3, (N,), dtype=jnp.float32)
    loss2 = jax.block_until_ready(
        l2_loss_forward(pred2, target2, weight=weight,
                        reduction_override='none'))
    ref2 = _reference(pred2, target2, weight=weight, reduction='none')
    assert loss2.shape == (N,)
    assert jnp.allclose(loss2, ref2, rtol=1e-5, atol=1e-5)

    # 3) bf16 inputs (kernel DMAs native dtype, upcasts in-register), 'sum'.
    pred3 = pred.astype(jnp.bfloat16)
    target3 = target.astype(jnp.bfloat16)
    loss3 = jax.block_until_ready(
        l2_loss_forward(pred3, target3, reduction='sum'))
    ref3 = _reference(pred3.astype(jnp.float32), target3.astype(jnp.float32),
                      reduction='sum')
    assert jnp.allclose(loss3, ref3, rtol=1e-4, atol=1e-4), (loss3, ref3)

    # 4) Large-N path (exercises the big-tile / partial-last-block branch).
    N4 = 9000
    pred4 = jax.random.normal(k1, (N4, K, 2), dtype=jnp.float32)
    target4 = jax.random.normal(k2, (N4, K, 2), dtype=jnp.float32)
    loss4 = jax.block_until_ready(
        l2_loss_forward(pred4, target4, reduction='mean'))
    ref4 = _reference(pred4, target4, reduction='mean')
    assert jnp.allclose(loss4, ref4, rtol=1e-5, atol=1e-5), (loss4, ref4)

    print("KERNEL_OK")
</pallas_src>

<mosaic_0001>
module attributes {stable_mosaic.version = 11 : i64} {
  func.func @_l2_row_kernel(%arg0: i32, %arg1: memref<1xf32, #tpu.memory_space<smem>>, %arg2: memref<72x36xf32, #tpu.memory_space<vmem>>, %arg3: memref<130x72xf32, #tpu.memory_space<vmem>>, %arg4: memref<130x72xf32, #tpu.memory_space<vmem>>, %arg5: memref<130x1xf32, #tpu.memory_space<vmem>>) attributes {dimension_semantics = [#tpu.dimension_semantics<parallel>], iteration_bounds = array<i64: 1>, scalar_prefetch = 0 : i64, scratch_operands = 0 : i64, tpu.core_type = #tpu.core_type<tc>, window_params = [{transform_indices = @transform_0, window_bounds = array<i64: 1>}, {pipeline_mode = #tpu.pipeline_mode<synchronous>, transform_indices = @transform_1, window_bounds = array<i64: 72, 36>}, {transform_indices = @transform_2, window_bounds = array<i64: 130, 72>}, {transform_indices = @transform_3, window_bounds = array<i64: 130, 72>}, {transform_indices = @transform_4, window_bounds = array<i64: 130, 1>}]} {
    %c0 = arith.constant 0 : index
    %c0_0 = arith.constant 0 : index
    %0 = vector.load %arg3[%c0, %c0_0] : memref<130x72xf32, #tpu.memory_space<vmem>>, vector<130x72xf32>
    %c0_1 = arith.constant 0 : index
    %c0_2 = arith.constant 0 : index
    %1 = vector.load %arg4[%c0_1, %c0_2] : memref<130x72xf32, #tpu.memory_space<vmem>>, vector<130x72xf32>
    %c0_3 = arith.constant 0 : index
    %2 = memref.load %arg1[%c0_3] : memref<1xf32, #tpu.memory_space<smem>>
    %3 = vector.broadcast %2 : f32 to vector<130x72xf32>
    %4 = arith.mulf %1, %3 : vector<130x72xf32>
    %5 = arith.subf %0, %4 : vector<130x72xf32>
    %6 = arith.mulf %5, %5 : vector<130x72xf32>
    %c0_4 = arith.constant 0 : index
    %c0_5 = arith.constant 0 : index
    %7 = vector.load %arg2[%c0_4, %c0_5] : memref<72x36xf32, #tpu.memory_space<vmem>>, vector<72x36xf32>
    %cst = arith.constant dense<0.000000e+00> : vector<130x36xf32>
    %8 = tpu.matmul %6, %7, %cst {dimension_numbers = #tpu.dot_dimension_numbers<[1], [0], [0], [1], [0, 0, 1, 1], [], []>} : vector<130x72xf32>, vector<72x36xf32>, vector<130x36xf32> -> vector<130x36xf32>
    %9 = math.sqrt %8 : vector<130x36xf32>
    %cst_6 = arith.constant dense<0.000000e+00> : vector<130xf32>
    %10 = vector.multi_reduction <add>, %9, %cst_6 [1] : vector<130x36xf32> to vector<130xf32>
    %11 = vector.shape_cast %10 : vector<130xf32> to vector<130x1xf32>
    %cst_7 = arith.constant 0.027777778 : f32
    %12 = vector.broadcast %cst_7 : f32 to vector<130x1xf32>
    %13 = arith.mulf %11, %12 : vector<130x1xf32>
    %c0_8 = arith.constant 0 : index
    %c0_9 = arith.constant 0 : index
    %14 = vector.load %arg5[%c0_8, %c0_9] : memref<130x1xf32, #tpu.memory_space<vmem>>, vector<130x1xf32>
    tpu.vector_store %arg5[%c0_8, %c0_9], %13 {strides = array<i32>} : memref<130x1xf32, #tpu.memory_space<vmem>>, vector<130x1xf32>,
    return
  }
  func.func @transform_0(%arg0: i32) -> i32 {
    %c0_i32 = arith.constant 0 : i32
    %c0_i32_0 = arith.constant 0 : i32
    return %c0_i32 : i32
  }
  func.func @transform_1(%arg0: i32) -> (i32, i32) {
    %c0_i32 = arith.constant 0 : i32
    %c0_i32_0 = arith.constant 0 : i32
    %c0_i32_1 = arith.constant 0 : i32
    return %c0_i32, %c0_i32_0 : i32, i32
  }
  func.func @transform_2(%arg0: i32) -> (i32, i32) {
    %c0_i32 = arith.constant 0 : i32
    %c0_i32_0 = arith.constant 0 : i32
    return %arg0, %c0_i32 : i32, i32
  }
  func.func @transform_3(%arg0: i32) -> (i32, i32) {
    %c0_i32 = arith.constant 0 : i32
    %c0_i32_0 = arith.constant 0 : i32
    return %arg0, %c0_i32 : i32, i32
  }
  func.func @transform_4(%arg0: i32) -> (i32, i32) {
    %c0_i32 = arith.constant 0 : i32
    %c0_i32_0 = arith.constant 0 : i32
    return %arg0, %c0_i32 : i32, i32
  }
}

</mosaic_0001>

<bundles_post_ra>
// kernel: tpu_custom_call.1
= control target key start
LH: loop header
LB: loop body
LE: loop exit
PB: predicated region body
PF: predicated region fallthrough
CT: control target
= control target key end

     0   :  { %10 = vsyncpa [#allocation4], 0  ;;  %s1090_s0 = inlined_call_operand.<no memory space> [shape: f32[1], index: 0, kind: input, shape index: {}]   ;;  %s1091_s1 = inlined_call_operand.vmem [shape: f32[72,36], index: 1, kind: input, shape index: {}]   ;;  %s1092_s2 = inlined_call_operand.hbm [shape: f32[130,72], index: 2, kind: input, shape index: {}]   ;;  %s1093_s3 = inlined_call_operand.hbm [shape: f32[130,72], index: 3, kind: input, shape index: {}]   ;;  %s1094_s4 = inlined_call_operand.vmem [shape: f32[130,1], index: 4, kind: output, shape index: {}]  }
   0x1   :  { %s20_s17 = sshll.u32 %s1092_s2, 4  ;;  %s21_s17 = int_to_ptr.hbm [resolvable:$true] %s20_s17 }
   0x2   :  { %11 = vsyncpa [#allocation6], 0  ;;  %s699_s18 = smov [#allocation3]   ;;  %s33_s22 = sshll.u32 %s1093_s3, 4  ;;  %s34_s22 = int_to_ptr.hbm [resolvable:$true] %s33_s22 }
   0x3   :  { %s22_s19 = sshll.u32 %s699_s18, 4  ;;  %s700_s23 = smov 128   ;;  %s23_s19 = int_to_ptr.vmem [resolvable:$true] %s22_s19 }
   0x4   :  { %s701_s24 = smov 8   ;;  %s702_s25 = smov [#allocation5]  }
   0x5   :  { %28 = dma.hbm_to_vmem [thread:$0]  %s21_s17, 2176, %s23_s19, [#allocation4], %s700_s23, %s700_s23, %s701_s24  }
   0x6   :  { %s35_s26 = sshll.u32 %s702_s25, 4  ;;  %s36_s26 = int_to_ptr.vmem [resolvable:$true] %s35_s26 }
   0x7   :  { %41 = dma.hbm_to_vmem [thread:$0]  %s34_s22, 2176, %s36_s26, [#allocation6], %s700_s23, %s700_s23, %s701_s24  }
   0x8   :  { %695 = dma.done.wait [#allocation4], 2176  }
   0x9   :  { %696 = vsyncadd [#allocation4], 4294965120 }
   0xa   :  { %697 = dma.done.wait [#allocation6], 2176  }
   0xb   :  { %698 = vsyncadd [#allocation6], 4294965120  ;;  %v145_v0 = vld [vmem:[%s1091_s1 + $0x40] sm:$0xff]  ;;  %v144_v1 = vld [vmem:[%s1091_s1 + $0x38] sm:$0xff]  ;;  %v746_v4 = vstv %s1090_s0  ;;  %vm146_vm0 = vcmask 588800   ;;  %vm470_vm1 = vcmask 293888  }
   0xc   :  { %205 = vmatpush.msra.mxu0 %v145_v0  ;;  %582 = vmatpush.msra.mxu1 %v145_v0  ;;  %v143_v2 = vld [vmem:[%s1091_s1 + $0x30] sm:$0xff]  ;;  %v67_v3 = vld [vmem:[#allocation5] sm:$0xff]  ;;  %v141_v9 = vld [vmem:[%s1091_s1 + $0x20] sm:$0xff] }
   0xd   :  { %583 = vmatpush.msra.mxu2 %v145_v0  ;;  %584 = vmatpush.msra.mxu3 %v145_v0  ;;  %v142_v5 = vld [vmem:[%s1091_s1 + $0x28] sm:$0xff]  ;;  %v80_v8 = vld [vmem:[#allocation5 + $0x68] sm:$0xff]  ;;  %v86_v10 = vmul.f32 %v746_v4, %v67_v3  ;;  %v50_v11 = vld [vmem:[#allocation3] sm:$0xff] }
   0xe   :  { %206 = vmatpush.msra.mxu0 %v144_v1  ;;  %585 = vmatpush.msra.mxu1 %v144_v1  ;;  %v71_v6 = vld [vmem:[#allocation5 + $0x20] sm:$0xff]  ;;  %v140_v14 = vld [vmem:[%s1091_s1 + $0x18] sm:$0xff]  ;;  %v54_v15 = vld [vmem:[#allocation3 + $0x20] sm:$0xff]  ;;  %v99_v17 = vmul.f32 %v746_v4, %v80_v8 }
   0xf   :  { %586 = vmatpush.msra.mxu2 %v144_v1  ;;  %587 = vmatpush.msra.mxu3 %v144_v1  ;;  %v75_v7 = vld [vmem:[#allocation5 + $0x40] sm:$0xff]  ;;  %v90_v12 = vmul.f32 %v746_v4, %v71_v6  ;;  %v58_v16 = vld [vmem:[#allocation3 + $0x40] sm:$0xff]  ;;  %v139_v19 = vld [vmem:[%s1091_s1 + $0x10] sm:$0xff]  ;;  %v103_v20 = vsub.f32 %v50_v11, %v86_v10 }
  0x10   :  { %207 = vmatpush.msra.mxu0 %v143_v2  ;;  %588 = vmatpush.msra.mxu1 %v143_v2  ;;  %v94_v13 = vmul.f32 %v746_v4, %v75_v7  ;;  %v63_v18 = vld [vmem:[#allocation3 + $0x68] sm:$0xff]  ;;  %v68_v23 = vld [vmem:[#allocation5 + $0x8] sm:$0xff]  ;;  %v81_v28 = vld [vmem:[#allocation5 + $0x70] sm:$0xff] }
  0x11   :  { %589 = vmatpush.msra.mxu2 %v143_v2  ;;  %590 = vmatpush.msra.mxu3 %v143_v2  ;;  %v107_v21 = vsub.f32 %v54_v15, %v90_v12  ;;  %v138_v24 = vld [vmem:[%s1091_s1 + $0x8] sm:$0xff]  ;;  %v116_v25 = vsub.f32 %v63_v18, %v99_v17  ;;  %v72_v26 = vld [vmem:[#allocation5 + $0x28] sm:$0xff]  ;;  %v137_v29 = vld [vmem:[%s1091_s1] sm:$0xff]  ;;  %v120_v30 = vmul.f32 %v103_v20, %v103_v20 }
  0x12   :  { %208 = vmatpush.msra.mxu0 %v142_v5  ;;  %591 = vmatpush.msra.mxu1 %v142_v5  ;;  %v111_v22 = vsub.f32 %v58_v16, %v94_v13  ;;  %v76_v27 = vld [vmem:[#allocation5 + $0x48] sm:$0xff]  ;;  %v87_v31 = vmul.f32 %v746_v4, %v68_v23  ;;  %v91_v34 = vmul.f32 %v746_v4, %v72_v26  ;;  %v51_v36 = vld [vmem:[#allocation3 + $0x8] sm:$0xff]  ;;  %v69_v46 = vld [vmem:[#allocation5 + $0x10] sm:$0xff] }
  0x13   :  { %592 = vmatpush.msra.mxu2 %v142_v5  ;;  %593 = vmatpush.msra.mxu3 %v142_v5  ;;  %v124_v32 = vmul.f32 %v107_v21, %v107_v21  ;;  %v133_v35 = vmul.f32 %v116_v25, %v116_v25  ;;  %v55_v37 = vld [vmem:[#allocation3 + $0x28] sm:$0xff]  ;;  %v95_v38 = vmul.f32 %v746_v4, %v76_v27  ;;  %v64_v41 = vld [vmem:[#allocation3 + $0x70] sm:$0xff]  ;;  %v73_v47 = vld [vmem:[#allocation5 + $0x30] sm:$0xff] }
  0x14   :  { %209 = vmatpush.msra.mxu0 %v141_v9  ;;  %594 = vmatpush.msra.mxu1 %v141_v9  ;;  %v128_v33 = vmul.f32 %v111_v22, %v111_v22  ;;  %v100_v39 = vmul.f32 %v746_v4, %v81_v28  ;;  %v59_v40 = vld [vmem:[#allocation3 + $0x48] sm:$0xff]  ;;  %v104_v42 = vsub.f32 %v51_v36, %v87_v31  ;;  %v77_v48 = vld [vmem:[#allocation5 + $0x50] sm:$0xff]  ;;  %v82_v49 = vld [vmem:[#allocation5 + $0x78] sm:$0xff] }
  0x15   :  { %595 = vmatpush.msra.mxu2 %v141_v9  ;;  %596 = vmatpush.msra.mxu3 %v141_v9  ;;  %v108_v43 = vsub.f32 %v55_v37, %v91_v34  ;;  %v112_v44 = vsub.f32 %v59_v40, %v95_v38  ;;  %v88_v52 = vmul.f32 %v746_v4, %v69_v46  ;;  %v52_v56 = vld [vmem:[#allocation3 + $0x10] sm:$0xff]  ;;  %v65_v61 = vld [vmem:[#allocation3 + $0x78] sm:$0xff]  ;;  %v70_v2 = vld [vmem:[#allocation5 + $0x18] sm:$0xff] }
  0x16   :  { %210 = vmatpush.msra.mxu0 %v140_v14  ;;  %597 = vmatpush.msra.mxu1 %v140_v14  ;;  %v117_v45 = vsub.f32 %v64_v41, %v100_v39  ;;  %v121_v50 = vmul.f32 %v104_v42, %v104_v42  ;;  %v92_v53 = vmul.f32 %v746_v4, %v73_v47  ;;  %v56_v57 = vld [vmem:[#allocation3 + $0x30] sm:$0xff]  ;;  %v74_v3 = vld [vmem:[#allocation5 + $0x38] sm:$0xff]  ;;  %v83_v6 = vld [vmem:[#allocation5 + $0x80] sm:$0x3] }
  0x17   :  { %598 = vmatpush.msra.mxu2 %v140_v14  ;;  %599 = vmatpush.msra.mxu3 %v140_v14  ;;  %v125_v51 = vmul.f32 %v108_v43, %v108_v43  ;;  %v129_v54 = vmul.f32 %v112_v44, %v112_v44  ;;  %v96_v58 = vmul.f32 %v746_v4, %v77_v48  ;;  %v60_v60 = vld [vmem:[#allocation3 + $0x50] sm:$0xff]  ;;  %v78_v5 = vld [vmem:[#allocation5 + $0x58] sm:$0xff]  ;;  %v53_v13 = vld [vmem:[#allocation3 + $0x18] sm:$0xff] }
  0x18   :  { %211 = vmatpush.msra.mxu0 %v139_v19  ;;  %600 = vmatpush.msra.mxu1 %v139_v19  ;;  %v134_v55 = vmul.f32 %v117_v45, %v117_v45  ;;  %v101_v59 = vmul.f32 %v746_v4, %v82_v49  ;;  %v105_v62 = vsub.f32 %v52_v56, %v88_v52  ;;  %v57_v14 = vld [vmem:[#allocation3 + $0x38] sm:$0xff]  ;;  %v66_v18 = vld [vmem:[#allocation3 + $0x80] sm:$0x3]  ;;  %v79_v23 = vld [vmem:[#allocation5 + $0x60] sm:$0xff] }
  0x19   :  { %601 = vmatpush.msra.mxu2 %v139_v19  ;;  %602 = vmatpush.msra.mxu3 %v139_v19  ;;  %v109_v63 = vsub.f32 %v56_v57, %v92_v53  ;;  %v113_v0 = vsub.f32 %v60_v60, %v96_v58  ;;  %v89_v9 = vmul.f32 %v746_v4, %v70_v2  ;;  %v61_v17 = vld [vmem:[#allocation3 + $0x58] sm:$0xff] }
  0x1a   :  { %212 = vmatpush.msra.mxu0 %v138_v24  ;;  %603 = vmatpush.msra.mxu1 %v138_v24  ;;  %v118_v1 = vsub.f32 %v65_v61, %v101_v59  ;;  %v122_v7 = vmul.f32 %v105_v62, %v105_v62  ;;  %v93_v10 = vmul.f32 %v746_v4, %v74_v3 }
  0x1b   :  { %604 = vmatpush.msra.mxu2 %v138_v24  ;;  %605 = vmatpush.msra.mxu3 %v138_v24  ;;  %v126_v8 = vmul.f32 %v109_v63, %v109_v63  ;;  %v130_v11 = vmul.f32 %v113_v0, %v113_v0  ;;  %v97_v15 = vmul.f32 %v746_v4, %v78_v5 }
  0x1c   :  { %213 = vmatpush.msra.mxu0 %v137_v29  ;;  %606 = vmatpush.msra.mxu1 %v137_v29  ;;  %v135_v12 = vmul.f32 %v118_v1, %v118_v1  ;;  %v102_v16 = vmul.f32 %v746_v4, %v83_v6  ;;  %v106_v19 = vsub.f32 %v53_v13, %v89_v9 }
  0x1d   :  { %607 = vmatpush.msra.mxu2 %v137_v29  ;;  %608 = vmatpush.msra.mxu3 %v137_v29  ;;  %v110_v20 = vsub.f32 %v57_v14, %v93_v10  ;;  %v114_v21 = vsub.f32 %v61_v17, %v97_v15  ;;  %v98_v28 = vmul.f32 %v746_v4, %v79_v23  ;;  %v62_v29 = vld [vmem:[#allocation3 + $0x60] sm:$0xff] }
  0x1e   :  { %565 = vmatmul.msk.f32.vlgmr.msra.gmra.mxu0 %vm146_vm0, %v120_v30  ;;  %569 = vmatmul.msk.f32.vlgmr.msra.gmra.mxu1 %vm146_vm0, %v124_v32  ;;  %v119_v22 = vsub.f32 %v66_v18, %v102_v16  ;;  %v123_v24 = vmul.f32 %v106_v19, %v106_v19 }
  0x1f   :  { %573 = vmatmul.msk.f32.vlgmr.msra.gmra.mxu2 %vm146_vm0, %v128_v33  ;;  %578 = vmatmul.msk.f32.vlgmr.msra.gmra.mxu3 %vm146_vm0, %v133_v35  ;;  %v127_v25 = vmul.f32 %v110_v20, %v110_v20  ;;  %v131_v26 = vmul.f32 %v114_v21, %v114_v21  ;;  %v115_v30 = vsub.f32 %v62_v29, %v98_v28 }
  0x20   :  { %v136_v27 = vmul.f32 %v119_v22, %v119_v22 }
  0x21   :  { %v132_v31 = vmul.f32 %v115_v30, %v115_v30 }
  0x26   :  { %566 = vmatmul.msk.f32.gmra.mxu0 %vm146_vm0, %v121_v50  ;;  %570 = vmatmul.msk.f32.gmra.mxu1 %vm146_vm0, %v125_v51 }
  0x27   :  { %574 = vmatmul.msk.f32.gmra.mxu2 %vm146_vm0, %v129_v54  ;;  %579 = vmatmul.msk.f32.gmra.mxu3 %vm146_vm0, %v134_v55 }
  0x2e   :  { %567 = vmatmul.msk.f32.gmra.mxu0 %vm146_vm0, %v122_v7  ;;  %571 = vmatmul.msk.f32.gmra.mxu1 %vm146_vm0, %v126_v8 }
  0x2f   :  { %575 = vmatmul.msk.f32.gmra.mxu2 %vm146_vm0, %v130_v11  ;;  %580 = vmatmul.msk.f32.gmra.mxu3 %vm146_vm0, %v135_v12 }
  0x36   :  { %568 = vmatmul.msk.f32.gmra.mxu0 %vm146_vm0, %v123_v24  ;;  %572 = vmatmul.msk.f32.gmra.mxu1 %vm146_vm0, %v127_v25 }
  0x37   :  { %576 = vmatmul.msk.f32.gmra.mxu2 %vm146_vm0, %v131_v26  ;;  %581 = vmatmul.msk.f32.gmra.mxu3 %vm146_vm0, %v136_v27 }
  0x3f   :  { %577 = vmatmul.msk.f32.gmra.mxu2 %vm146_vm0, %v132_v31 }
  0x9b   :  { %v800_v32 = vpop.f32.mrf.mxu0  ;;  %v802_v33 = vpop.f32.mrf.mxu1 }
  0x9c   :  { %613 = vrsqrt.f32 %v800_v32  ;;  %vm321_vm2 = vcmp.eq.f32.partialorder %v802_v33, inf  ;;  %vm323_vm3 = vcmp.eq.f32.partialorder %v802_v33, 0.0  ;;  %v324_v46 = vand.u32 2147483648, %v802_v33 }
  0x9d   :  { %615 = vrsqrt.f32 %v802_v33  ;;  %vm273_vm4 = vcmp.eq.f32.partialorder %v800_v32, inf  ;;  %vm275_vm5 = vcmp.eq.f32.partialorder %v800_v32, 0.0  ;;  %v276_v57 = vand.u32 2147483648, %v800_v32 }
  0xa2   :  { %v614_v4 = vpop.eup %613  ;;  %v806_v34 = vpop.f32.mrf.mxu2 }
  0xa3   :  { %v808_v35 = vpop.f32.mrf.mxu3  ;;  %v616_v36 = vpop.eup %615  ;;  %617 = vrsqrt.f32 %v806_v34  ;;  %v267_v39 = vmul.f32 %v614_v4, %v800_v32  ;;  %vm369_vm6 = vcmp.eq.f32.partialorder %v806_v34, inf  ;;  %vm371_vm8 = vcmp.eq.f32.partialorder %v806_v34, 0.0 }
  0xa4   :  { %v811_v37 = vpop.f32.mrf.mxu0  ;;  %v813_v38 = vpop.f32.mrf.mxu1  ;;  %619 = vrsqrt.f32 %v808_v35  ;;  %v315_v40 = vmul.f32 %v616_v36, %v802_v33  ;;  %v432_v61 = vand.u32 2147483648, %v808_v35  ;;  %vm429_vm7 = vcmp.eq.f32.partialorder %v808_v35, inf }
  0xa5   :  { %621 = vrsqrt.f32 %v811_v37  ;;  %v268_v41 = vmul.f32 %v614_v4, %v267_v39  ;;  %v372_v6 = vand.u32 2147483648, %v806_v34  ;;  %vm431_vm9 = vcmp.eq.f32.partialorder %v808_v35, 0.0 }
  0xa6   :  { %623 = vrsqrt.f32 %v813_v38  ;;  %v316_v42 = vmul.f32 %v616_v36, %v315_v40  ;;  %vm285_vm10 = vcmp.eq.f32.partialorder %v811_v37, inf  ;;  %vm287_vm11 = vcmp.eq.f32.partialorder %v811_v37, 0.0 }
  0xa7   :  { %v269_v43 = vmul.f32 0.5, %v268_v41  ;;  %v288_v29 = vand.u32 2147483648, %v811_v37  ;;  %vm333_vm12 = vcmp.eq.f32.partialorder %v813_v38, inf  ;;  %vm335_vm13 = vcmp.eq.f32.partialorder %v813_v38, 0.0 }
  0xa8   :  { %v317_v44 = vmul.f32 0.5, %v316_v42 }
  0xa9   :  { %v618_v45 = vpop.eup %617  ;;  %v270_v47 = vsub.f32 1.5, %v269_v43 }
  0xaa   :  { %v620_v48 = vpop.eup %619  ;;  %v823_v49 = vpop.f32.mrf.mxu2  ;;  %v318_v51 = vsub.f32 1.5, %v317_v44  ;;  %v363_v52 = vmul.f32 %v618_v45, %v806_v34 }
  0xab   :  { %v825_v50 = vpop.f32.mrf.mxu3  ;;  %v622_v53 = vpop.eup %621  ;;  %625 = vrsqrt.f32 %v823_v49  ;;  %v271_v56 = vmul.f32 %v614_v4, %v270_v47  ;;  %v423_v58 = vmul.f32 %v620_v48, %v808_v35  ;;  %vm381_vm14 = vcmp.eq.f32.partialorder %v823_v49, inf }
  0xac   :  { %v831_v54 = vpop.f32.mrf.mxu0  ;;  %v833_v55 = vpop.f32.mrf.mxu1  ;;  %v319_v60 = vmul.f32 %v616_v36, %v318_v51  ;;  %v364_v62 = vmul.f32 %v618_v45, %v363_v52  ;;  %v279_v63 = vmul.f32 %v622_v53, %v811_v37  ;;  %vm383_vm15 = vcmp.eq.f32.partialorder %v823_v49, 0.0 }
  0xad   :  { %v624_v59 = vpop.eup %623  ;;  %627 = vrsqrt.f32 %v831_v54  ;;  %v272_v0 = vmul.f32 %v271_v56, %v800_v32  ;;  %v424_v1 = vmul.f32 %v620_v48, %v423_v58  ;;  %vm297_vm0 = vcmp.eq.f32.partialorder %v831_v54, inf }
  0xae   :  { %v327_v2 = vmul.f32 %v624_v59, %v813_v38  ;;  %v320_v3 = vmul.f32 %v319_v60, %v802_v33  ;;  %v365_v5 = vmul.f32 0.5, %v364_v62  ;;  %v280_v7 = vmul.f32 %v622_v53, %v279_v63 }
  0xaf   :  { %v274_v8 = vsel %vm273_vm4, %v800_v32, %v272_v0  ;;  %v425_v9 = vmul.f32 0.5, %v424_v1  ;;  %629 = vrsqrt.f32 %v833_v55  ;;  %vm347_vm4 = vcmp.eq.f32.partialorder %v833_v55, 0.0 }
  0xb0   :  { %v328_v10 = vmul.f32 %v624_v59, %v327_v2  ;;  %v322_v11 = vsel %vm321_vm2, %v802_v33, %v320_v3  ;;  %v277_v12 = vsel %vm275_vm5, %v276_v57, %v274_v8  ;;  %v366_v13 = vsub.f32 1.5, %v365_v5 }
  0xb1   :  { %v281_v14 = vmul.f32 0.5, %v280_v7  ;;  %v626_v15 = vpop.eup %625  ;;  %v325_v16 = vsel %vm323_vm3, %v324_v46, %v322_v11  ;;  %v471_v17 = vsel %vm470_vm1, %v277_v12, 0.0  ;;  %v426_v18 = vsub.f32 1.5, %v425_v9 }
  0xb2   :  { %v329_v19 = vmul.f32 0.5, %v328_v10  ;;  %v861_v20 = vpop.f32.mrf.mxu2  ;;  %v483_v21 = vsel %vm470_vm1, %v325_v16, 0.0  ;;  %472 = vadd.xlane.f32.xlu0 %v471_v17  ;;  %v367_v22 = vmul.f32 %v618_v45, %v366_v13  ;;  %v375_v24 = vmul.f32 %v626_v15, %v823_v49 }
  0xb3   :  { %v282_v23 = vsub.f32 1.5, %v281_v14  ;;  %v628_v25 = vpop.eup %627  ;;  %v865_v26 = vpop.f32.mrf.mxu3  ;;  %484 = vadd.xlane.f32.xlu2 %v483_v21  ;;  %v427_v28 = vmul.f32 %v620_v48, %v426_v18  ;;  %631 = vrsqrt.f32 %v861_v20  ;;  %v384_v5 = vand.u32 2147483648, %v823_v49 }
  0xb4   :  { %v867_v27 = vpop.f32.mrf.mxu0  ;;  %v330_v30 = vsub.f32 1.5, %v329_v19  ;;  %v368_v31 = vmul.f32 %v367_v22, %v806_v34  ;;  %v376_v33 = vmul.f32 %v626_v15, %v375_v24  ;;  %v874_v4 = vpop.f32.mrf.mxu1  ;;  %v291_v40 = vmul.f32 %v628_v25, %v831_v54 }
  0xb5   :  { %v283_v32 = vmul.f32 %v622_v53, %v282_v23  ;;  %v428_v36 = vmul.f32 %v427_v28, %v808_v35  ;;  %633 = vrsqrt.f32 %v867_v27  ;;  %v630_v58 = vpop.eup %629  ;;  %vm299_vm2 = vcmp.eq.f32.partialorder %v831_v54, 0.0 }
  0xb6   :  { %v331_v39 = vmul.f32 %v624_v59, %v330_v30  ;;  %v370_v41 = vsel %vm369_vm6, %v806_v34, %v368_v31  ;;  %v377_v43 = vmul.f32 0.5, %v376_v33  ;;  %v292_v47 = vmul.f32 %v628_v25, %v291_v40 }
  0xb7   :  { %v284_v42 = vmul.f32 %v283_v32, %v811_v37  ;;  %v430_v44 = vsel %vm429_vm7, %v808_v35, %v428_v36  ;;  %v373_v45 = vsel %vm371_vm8, %v372_v6, %v370_v41  ;;  %635 = vrsqrt.f32 %v874_v4 }
  0xb8   :  { %v332_v46 = vmul.f32 %v331_v39, %v813_v38  ;;  %v433_v48 = vsel %vm431_vm9, %v432_v61, %v430_v44  ;;  %v378_v52 = vsub.f32 1.5, %v377_v43  ;;  %v293_v57 = vmul.f32 0.5, %v292_v47 }
  0xb9   :  { %v286_v51 = vsel %vm285_vm10, %v811_v37, %v284_v42  ;;  %v510_v53 = vsel %vm470_vm1, %v433_v48, 0.0  ;;  %v495_v35 = vsel %vm470_vm1, %v373_v45, 0.0  ;;  %v336_v61 = vand.u32 2147483648, %v813_v38  ;;  %v632_v63 = vpop.eup %631 }
  0xba   :  { %v289_v56 = vsel %vm287_vm11, %v288_v29, %v286_v51  ;;  %v334_v34 = vsel %vm333_vm12, %v813_v38, %v332_v46  ;;  %511 = vadd.xlane.f32.xlu1 %v510_v53  ;;  %v901_v59 = vpop.f32.mrf.mxu2  ;;  %v379_v62 = vmul.f32 %v626_v15, %v378_v52  ;;  %v294_v37 = vsub.f32 1.5, %v293_v57 }
  0xbb   :  { %v474_v60 = vsel %vm470_vm1, %v289_v56, 0.0  ;;  %637 = vrsqrt.f32 %v901_v59  ;;  %496 = vadd.xlane.f32.xlu2 %v495_v35  ;;  %v908_v0 = vpop.eup %633  ;;  %v337_v1 = vsel %vm335_vm13, %v336_v61, %v334_v34  ;;  %v913_v3 = vpop.f32.mrf.mxu3  ;;  %v339_v7 = vmul.f32 %v630_v58, %v833_v55 }
  0xbc   :  { %475 = vadd.xlane.f32.xlu0 %v474_v60  ;;  %639 = vrsqrt.f32 %v825_v50  ;;  %v380_v2 = vmul.f32 %v379_v62, %v823_v49  ;;  %v295_v6 = vmul.f32 %v628_v25, %v294_v37  ;;  %v387_v9 = vmul.f32 %v632_v63, %v861_v20 }
  0xbd   :  { %v918_v38 = vpop.eup %635  ;;  %641 = vrsqrt.f32 %v865_v26  ;;  %v486_v10 = vsel %vm470_vm1, %v337_v1, 0.0  ;;  %v340_v13 = vmul.f32 %v630_v58, %v339_v7  ;;  %v303_v14 = vmul.f32 %v908_v0, %v867_v27 }
  0xbe   :  { %v382_v8 = vsel %vm381_vm14, %v823_v49, %v380_v2  ;;  %v296_v12 = vmul.f32 %v295_v6, %v831_v54  ;;  %643 = vrsqrt.f32 %v913_v3  ;;  %v300_v15 = vand.u32 2147483648, %v831_v54 }
  0xbf   :  { %v385_v11 = vsel %vm383_vm15, %v384_v5, %v382_v8  ;;  %v388_v16 = vmul.f32 %v632_v63, %v387_v9  ;;  %v351_v49 = vmul.f32 %v918_v38, %v874_v4  ;;  %v341_v19 = vmul.f32 0.5, %v340_v13 }
  0xc0   :  { %v298_v18 = vsel %vm297_vm0, %v831_v54, %v296_v12  ;;  %v498_v23 = vsel %vm470_vm1, %v385_v11, 0.0  ;;  %vm345_vm3 = vcmp.eq.f32.partialorder %v833_v55, inf  ;;  %v304_v33 = vmul.f32 %v908_v0, %v303_v14 }
  0xc1   :  { %v638_v17 = vpop.eup %637  ;;  %v301_v24 = vsel %vm299_vm2, %v300_v15, %v298_v18  ;;  %v389_v25 = vmul.f32 0.5, %v388_v16  ;;  %v342_v30 = vsub.f32 1.5, %v341_v19  ;;  %v348_v39 = vand.u32 2147483648, %v833_v55 }
  0xc2   :  { %v640_v21 = vpop.eup %639  ;;  %v934_v22 = vpop.f32.mrf.mxu2  ;;  %v399_v28 = vmul.f32 %v638_v17, %v901_v59  ;;  %v477_v29 = vsel %vm470_vm1, %v301_v24, 0.0  ;;  %vm393_vm5 = vcmp.eq.f32.partialorder %v861_v20, inf  ;;  %vm395_vm6 = vcmp.eq.f32.partialorder %v861_v20, 0.0 }
  0xc3   :  { %645 = vrsqrt.f32 %v934_v22  ;;  %487 = vadd.xlane.f32.xlu2 %v486_v10  ;;  %v941_v54 = vpop.eup %641  ;;  %478 = vadd.xlane.f32.xlu1 %v477_v29  ;;  %v390_v31 = vsub.f32 1.5, %v389_v25  ;;  %v343_v36 = vmul.f32 %v630_v58, %v342_v30  ;;  %v435_v40 = vmul.f32 %v640_v21, %v825_v50 }
  0xc4   :  { %499 = vadd.xlane.f32.xlu0 %v498_v23  ;;  %v400_v32 = vmul.f32 %v638_v17, %v399_v28  ;;  %v948_v41 = vpop.eup %643  ;;  %v305_v44 = vmul.f32 0.5, %v304_v33  ;;  %v396_v46 = vand.u32 2147483648, %v861_v20  ;;  %vm405_vm7 = vcmp.eq.f32.partialorder %v901_v59, inf }
  0xc5   :  { %v391_v42 = vmul.f32 %v632_v63, %v390_v31  ;;  %v344_v45 = vmul.f32 %v343_v36, %v833_v55  ;;  %v436_v47 = vmul.f32 %v640_v21, %v435_v40  ;;  %vm407_vm8 = vcmp.eq.f32.partialorder %v901_v59, 0.0 }
  0xc6   :  { %v401_v43 = vmul.f32 0.5, %v400_v32  ;;  %v306_v52 = vsub.f32 1.5, %v305_v44  ;;  %v459_v56 = vmul.f32 %v948_v41, %v913_v3  ;;  %v408_v57 = vand.u32 2147483648, %v901_v59 }
  0xc7   :  { %v392_v48 = vmul.f32 %v391_v42, %v861_v20  ;;  %v346_v34 = vsel %vm345_vm3, %v833_v55, %v344_v45  ;;  %v437_v58 = vmul.f32 0.5, %v436_v47  ;;  %v352_v7 = vmul.f32 %v918_v38, %v351_v49 }
  0xc8   :  { %v402_v51 = vsub.f32 1.5, %v401_v43  ;;  %v349_v60 = vsel %vm347_vm4, %v348_v39, %v346_v34  ;;  %v307_v1 = vmul.f32 %v908_v0, %v306_v52  ;;  %vm309_vm9 = vcmp.eq.f32.partialorder %v867_v27, inf }
  0xc9   :  { %v646_v53 = vpop.eup %645  ;;  %v394_v61 = vsel %vm393_vm5, %v861_v20, %v392_v48  ;;  %v489_v63 = vsel %vm470_vm1, %v349_v60, 0.0  ;;  %v438_v2 = vsub.f32 1.5, %v437_v58  ;;  %v312_v9 = vand.u32 2147483648, %v867_v27 }
  0xca   :  { %v411_v35 = vmul.f32 %v646_v53, %v934_v22  ;;  %v403_v62 = vmul.f32 %v638_v17, %v402_v51  ;;  %v397_v37 = vsel %vm395_vm6, %v396_v46, %v394_v61  ;;  %v308_v8 = vmul.f32 %v307_v1, %v867_v27 }
  0xcb   :  { %v501_v5 = vsel %vm470_vm1, %v397_v37, 0.0  ;;  %v439_v20 = vmul.f32 %v640_v21, %v438_v2  ;;  %vm441_vm10 = vcmp.eq.f32.partialorder %v825_v50, inf  ;;  %v353_v11 = vmul.f32 0.5, %v352_v7 }
  0xcc   :  { %490 = vadd.xlane.f32.xlu0 %v489_v63  ;;  %v404_v6 = vmul.f32 %v403_v62, %v901_v59  ;;  %v412_v55 = vmul.f32 %v646_v53, %v411_v35  ;;  %502 = vadd.xlane.f32.xlu1 %v501_v5  ;;  %v310_v13 = vsel %vm309_vm9, %v867_v27, %v308_v8  ;;  %vm311_vm11 = vcmp.eq.f32.partialorder %v867_v27, 0.0 }
  0xcd   :  { %v440_v14 = vmul.f32 %v439_v20, %v825_v50  ;;  %v447_v15 = vmul.f32 %v941_v54, %v865_v26  ;;  %v354_v49 = vsub.f32 1.5, %v353_v11  ;;  %v313_v18 = vsel %vm311_vm11, %v312_v9, %v310_v13 }
  0xce   :  { %v406_v0 = vsel %vm405_vm7, %v901_v59, %v404_v6  ;;  %v413_v10 = vmul.f32 0.5, %v412_v55  ;;  %v444_v19 = vand.u32 2147483648, %v825_v50  ;;  %vm443_vm12 = vcmp.eq.f32.partialorder %v825_v50, 0.0 }
  0xcf   :  { %v409_v12 = vsel %vm407_vm8, %v408_v57, %v406_v0  ;;  %v448_v59 = vmul.f32 %v941_v54, %v447_v15  ;;  %v442_v21 = vsel %vm441_vm10, %v825_v50, %v440_v14  ;;  %v355_v24 = vmul.f32 %v918_v38, %v354_v49 }
  0xd0   :  { %v504_v16 = vsel %vm470_vm1, %v409_v12, 0.0  ;;  %v414_v17 = vsub.f32 1.5, %v413_v10  ;;  %vm417_vm13 = vcmp.eq.f32.partialorder %v934_v22, inf  ;;  %v460_v27 = vmul.f32 %v948_v41, %v459_v56 }
  0xd1   :  { %505 = vadd.xlane.f32.xlu2 %v504_v16  ;;  %v449_v25 = vmul.f32 0.5, %v448_v59  ;;  %v480_v28 = vsel %vm470_vm1, %v313_v18, 0.0  ;;  %v420_v30 = vand.u32 2147483648, %v934_v22  ;;  %v356_v31 = vmul.f32 %v355_v24, %v874_v4 }
  0xd2   :  { %v415_v23 = vmul.f32 %v646_v53, %v414_v17  ;;  %v445_v32 = vsel %vm443_vm12, %v444_v19, %v442_v21  ;;  %vm357_vm14 = vcmp.eq.f32.partialorder %v874_v4, inf  ;;  %v461_v33 = vmul.f32 0.5, %v460_v27 }
  0xd3   :  { %v450_v50 = vsub.f32 1.5, %v449_v25  ;;  %vm419_vm15 = vcmp.eq.f32.partialorder %v934_v22, 0.0  ;;  %v358_v36 = vsel %vm357_vm14, %v874_v4, %v356_v31  ;;  %v360_v40 = vand.u32 2147483648, %v874_v4 }
  0xd4   :  { %v416_v29 = vmul.f32 %v415_v23, %v934_v22  ;;  %481 = vadd.xlane.f32.xlu1 %v480_v28  ;;  %v462_v43 = vsub.f32 1.5, %v461_v33  ;;  %v513_v44 = vsel %vm470_vm1, %v445_v32, 0.0  ;;  %vm359_vm0 = vcmp.eq.f32.partialorder %v874_v4, 0.0 }
  0xd5   :  { %v451_v42 = vmul.f32 %v941_v54, %v450_v50  ;;  %vm453_vm2 = vcmp.eq.f32.partialorder %v865_v26, inf  ;;  %v361_v46 = vsel %vm359_vm0, %v360_v40, %v358_v36  ;;  %v456_v47 = vand.u32 2147483648, %v865_v26 }
  0xd6   :  { %v418_v38 = vsel %vm417_vm13, %v934_v22, %v416_v29  ;;  %v463_v48 = vmul.f32 %v948_v41, %v462_v43  ;;  %vm455_vm3 = vcmp.eq.f32.partialorder %v865_v26, 0.0  ;;  %vm465_vm4 = vcmp.eq.f32.partialorder %v913_v3, inf }
  0xd7   :  { %v421_v39 = vsel %vm419_vm15, %v420_v30, %v418_v38  ;;  %v452_v22 = vmul.f32 %v451_v42, %v865_v26  ;;  %v492_v4 = vsel %vm470_vm1, %v361_v46, 0.0  ;;  %v468_v53 = vand.u32 2147483648, %v913_v3 }
  0xd8   :  { %v507_v45 = vsel %vm470_vm1, %v421_v39, 0.0  ;;  %v464_v51 = vmul.f32 %v463_v48, %v913_v3  ;;  %vm467_vm5 = vcmp.eq.f32.partialorder %v913_v3, 0.0  ;;  %vm519_vm6 = vcmask 287744  }
  0xd9   :  { %514 = vadd.xlane.f32.xlu2 %v513_v44  ;;  %508 = vadd.xlane.f32.xlu0 %v507_v45  ;;  %v454_v54 = vsel %vm453_vm2, %v865_v26, %v452_v22  ;;  %vm540_vm7 = vcmask 7168  }
  0xda   :  { %v457_v52 = vsel %vm455_vm3, %v456_v47, %v454_v54  ;;  %v466_v56 = vsel %vm465_vm4, %v913_v3, %v464_v51 }
  0xdb   :  { %v516_v41 = vsel %vm470_vm1, %v457_v52, 0.0  ;;  %v469_v34 = vsel %vm467_vm5, %v468_v53, %v466_v56  ;;  %vm557_vm1 = vcmask 1024  }
  0xdc   :  { %493 = vadd.xlane.f32.xlu1 %v492_v4  ;;  %v520_v26 = vsel %vm519_vm6, %v469_v34, 0.0 }
  0xe1   :  { %517 = vadd.xlane.f32.xlu0 %v516_v41 }
  0xe4   :  { %521 = vadd.xlane.f32.xlu1 %v520_v26 }
 0x125   :  { %v473_v57 = vpop.xlane.xlu0 %472 }
 0x126   :  { %v485_v58 = vpop.xlane.xlu2 %484  ;;  %v523_v35 = vmul.f32 0.027777778, %v473_v57 }
 0x127   :  { %v527_v60 = vmul.f32 0.027777778, %v485_v58 }
 0x128   :  { %541 = vst.msk [vmem:[%s1094_s4] sm:$0xff] %vm540_vm7, %v523_v35 }
 0x129   :  { %545 = vst.msk [vmem:[%s1094_s4 + $0x20] sm:$0xff] %vm540_vm7, %v527_v60 }
 0x12d   :  { %v512_v3 = vpop.xlane.xlu1 %511 }
 0x12e   :  { %v536_v61 = vmul.f32 0.027777778, %v512_v3  ;;  %v497_v62 = vpop.xlane.xlu2 %496 }
 0x12f   :  { %v476_v63 = vpop.xlane.xlu0 %475  ;;  %v531_v37 = vmul.f32 0.027777778, %v497_v62 }
 0x130   :  { %v524_v1 = vmul.f32 0.027777778, %v476_v63  ;;  %554 = vst.msk [vmem:[%s1094_s4 + $0x68] sm:$0xff] %vm540_vm7, %v536_v61 }
 0x131   :  { %549 = vst.msk [vmem:[%s1094_s4 + $0x40] sm:$0xff] %vm540_vm7, %v531_v37 }
 0x132   :  { %542 = vst.msk [vmem:[%s1094_s4 + $0x8] sm:$0xff] %vm540_vm7, %v524_v1 }
 0x136   :  { %v488_v2 = vpop.xlane.xlu2 %487  ;;  %v479_v7 = vpop.xlane.xlu1 %478 }
 0x137   :  { %v500_v5 = vpop.xlane.xlu0 %499  ;;  %v528_v6 = vmul.f32 0.027777778, %v488_v2  ;;  %v525_v8 = vmul.f32 0.027777778, %v479_v7 }
 0x138   :  { %v532_v55 = vmul.f32 0.027777778, %v500_v5 }
 0x139   :  { %546 = vst.msk [vmem:[%s1094_s4 + $0x28] sm:$0xff] %vm540_vm7, %v528_v6 }
 0x13a   :  { %550 = vst.msk [vmem:[%s1094_s4 + $0x48] sm:$0xff] %vm540_vm7, %v532_v55 }
 0x13b   :  { %543 = vst.msk [vmem:[%s1094_s4 + $0x10] sm:$0xff] %vm540_vm7, %v525_v8 }
 0x13f   :  { %v491_v9 = vpop.xlane.xlu0 %490  ;;  %v503_v0 = vpop.xlane.xlu1 %502 }
 0x140   :  { %v529_v20 = vmul.f32 0.027777778, %v491_v9  ;;  %v533_v10 = vmul.f32 0.027777778, %v503_v0 }
 0x142   :  { %547 = vst.msk [vmem:[%s1094_s4 + $0x30] sm:$0xff] %vm540_vm7, %v529_v20 }
 0x143   :  { %551 = vst.msk [vmem:[%s1094_s4 + $0x50] sm:$0xff] %vm540_vm7, %v533_v10 }
 0x144   :  { %v506_v11 = vpop.xlane.xlu2 %505 }
 0x145   :  { %v534_v12 = vmul.f32 0.027777778, %v506_v11 }
 0x147   :  { %552 = vst.msk [vmem:[%s1094_s4 + $0x58] sm:$0xff] %vm540_vm7, %v534_v12  ;;  %v482_v13 = vpop.xlane.xlu1 %481 }
 0x148   :  { %v526_v14 = vmul.f32 0.027777778, %v482_v13 }
 0x14a   :  { %544 = vst.msk [vmem:[%s1094_s4 + $0x18] sm:$0xff] %vm540_vm7, %v526_v14 }
 0x14c   :  { %v515_v15 = vpop.xlane.xlu2 %514  ;;  %v509_v16 = vpop.xlane.xlu0 %508 }
 0x14d   :  { %v537_v17 = vmul.f32 0.027777778, %v515_v15  ;;  %v535_v49 = vmul.f32 0.027777778, %v509_v16 }
 0x14f   :  { %555 = vst.msk [vmem:[%s1094_s4 + $0x70] sm:$0xff] %vm540_vm7, %v537_v17  ;;  %v494_v18 = vpop.xlane.xlu1 %493 }
 0x150   :  { %553 = vst.msk [vmem:[%s1094_s4 + $0x60] sm:$0xff] %vm540_vm7, %v535_v49  ;;  %v530_v19 = vmul.f32 0.027777778, %v494_v18 }
 0x152   :  { %548 = vst.msk [vmem:[%s1094_s4 + $0x38] sm:$0xff] %vm540_vm7, %v530_v19 }
 0x154   :  { %v518_v59 = vpop.xlane.xlu0 %517 }
 0x155   :  { %v538_v21 = vmul.f32 0.027777778, %v518_v59 }
 0x157   :  { %556 = vst.msk [vmem:[%s1094_s4 + $0x78] sm:$0xff] %vm540_vm7, %v538_v21  ;;  %v522_v23 = vpop.xlane.xlu1 %521 }
 0x158   :  { %v539_v24 = vmul.f32 0.027777778, %v522_v23 }
 0x15a   :  { %558 = vst.msk [vmem:[%s1094_s4 + $0x80] sm:$0x3] %vm557_vm1, %v539_v24 }
 0x15b   :  { %563 = vsyncpa [#allocation4], 1 }
 0x15c   :  { %564 = vsyncpa [#allocation6], 1 }

</bundles_post_ra>
